<compile_context>
chip_gen: v5e
topology: v5e:2x2
jax: 0.10.0
libtpu: 0.0.40
codegen_flags: <defaults>
</compile_context>

<pallas_src>
import functools

import jax
import jax.numpy as jnp
from jax.experimental import pallas as pl
from jax.experimental.pallas import tpu as pltpu

IN_DIM = 28 * 28      # 784
HIDDEN_DIM = 64
_MAX_BATCH_TILE = 2048  # keeps 2x double-buffered (TB,784) f32 tiles well under v7x 64 MiB VMEM


def _round_up(n, m):
    return ((n + m - 1) // m) * m


def _autoencoder_kernel(x_ref, we_ref, be_ref, wd_ref, bd_ref, out_ref, *, compute_dtype):
    # x_ref:  (TB, 784)   input tile
    # we_ref: (64, 784)   encoder weight, native PyTorch layout
    # be_ref: (1, 64)     encoder bias
    # wd_ref: (784, 64)   decoder weight, native PyTorch layout
    # bd_ref: (1, 784)    decoder bias
    # out_ref:(TB, 784)   reconstructed output tile
    #
    # Contract on axis 1 of the RHS (== x @ W.T) so no weight transpose is materialized.
    dn = (((1,), (1,)), ((), ()))

    x = x_ref[...].astype(compute_dtype)
    we = we_ref[...].astype(compute_dtype)
    wd = wd_ref[...].astype(compute_dtype)

    encoded = jax.lax.dot_general(x, we, dn, preferred_element_type=jnp.float32)
    encoded = encoded + be_ref[...]

    decoded = jax.lax.dot_general(encoded.astype(compute_dtype), wd, dn,
                                  preferred_element_type=jnp.float32)
    decoded = decoded + bd_ref[...]

    out_ref[...] = decoded.astype(out_ref.dtype)


def linear_autoencoder_forward(x, w_enc, b_enc, w_dec, b_dec, *,
                               batch_tile=256, use_bf16_compute=False):
    """Forward pass of LinearAutoencoder.

    x:      any shape whose trailing dims flatten to 784 (e.g. (B, 1, 28, 28))
    w_enc:  (64, 784)  PyTorch-layout encoder weight
    b_enc:  (64,)
    w_dec:  (784, 64)  PyTorch-layout decoder weight
    b_dec:  (784,)
    returns (B, 784) float32
    """
    x2d = x.reshape(-1, IN_DIM).astype(jnp.float32)
    B = x2d.shape[0]

    # ---- tile-size selection -------------------------------------------------
    # Multiple of 8 sublanes, no larger than the (sublane-padded) batch, capped for VMEM.
    eff_tile = max(8, min(int(batch_tile), _MAX_BATCH_TILE))
    eff_tile = (eff_tile // 8) * 8
    b_pad8 = _round_up(B, 8)
    eff_tile = min(eff_tile, b_pad8)
    # v7x has 2 TensorCores: prefer >= 2 "parallel" grid steps over one giant tile.
    if pl.cdiv(b_pad8, eff_tile) < 2 and eff_tile > 8:
        eff_tile = max(8, _round_up(pl.cdiv(b_pad8, 2), 8))

    # ---- batch padding (replaces the old hard divisibility assert) ------------
    B_pad = _round_up(B, eff_tile)
    if B_pad != B:
        x2d = jnp.pad(x2d, ((0, B_pad - B), (0, 0)))
    grid = (B_pad // eff_tile,)

    # ---- explicit VMEM budget --------------------------------------------------
    f32b = 4
    tile_bytes = eff_tile * IN_DIM * f32b          # one (TB, 784) f32 tile
    weight_bytes = IN_DIM * HIDDEN_DIM * f32b      # one weight matrix
    bias_bytes = (IN_DIM + HIDDEN_DIM) * f32b
    # x tile + out tile double-buffered, both weights + biases double-buffered.
    vmem_need = 2 * 2 * tile_bytes + 2 * 2 * weight_bytes + 2 * bias_bytes
    vmem_limit = int(min(48 << 20, max(32 << 20, int(vmem_need * 1.5) + (2 << 20))))

    # Biases as (1, N) rows so they broadcast over the batch tile.
    be = b_enc.reshape(1, HIDDEN_DIM).astype(jnp.float32)
    bd = b_dec.reshape(1, IN_DIM).astype(jnp.float32)
    we = w_enc.astype(jnp.float32)                 # (64, 784), no transpose
    wd = w_dec.astype(jnp.float32)                 # (784, 64), no transpose

    compute_dtype = jnp.bfloat16 if use_bf16_compute else jnp.float32
    kernel = functools.partial(_autoencoder_kernel, compute_dtype=compute_dtype)

    out = pl.pallas_call(
        kernel,
        out_shape=jax.ShapeDtypeStruct((B_pad, IN_DIM), jnp.float32),
        grid_spec=pltpu.PrefetchScalarGridSpec(
            num_scalar_prefetch=0,
            grid=grid,
            in_specs=[
                pl.BlockSpec((eff_tile, IN_DIM), lambda i: (i, 0)),      # x tile
                pl.BlockSpec((HIDDEN_DIM, IN_DIM), lambda i: (0, 0)),    # encoder W (resident)
                pl.BlockSpec((1, HIDDEN_DIM), lambda i: (0, 0)),         # encoder b
                pl.BlockSpec((IN_DIM, HIDDEN_DIM), lambda i: (0, 0)),    # decoder W (resident)
                pl.BlockSpec((1, IN_DIM), lambda i: (0, 0)),             # decoder b
            ],
            out_specs=pl.BlockSpec((eff_tile, IN_DIM), lambda i: (i, 0)),
        ),
        compiler_params=pltpu.CompilerParams(
            dimension_semantics=("parallel",),
            vmem_limit_bytes=vmem_limit,
        ),
    )(x2d, we, be, wd, bd)

    return out[:B] if B_pad != B else out


def _init_params(key):
    """Deterministic parameter init matching nn.Linear shapes (uniform like PyTorch default)."""
    k1, k2, k3, k4 = jax.random.split(key, 4)
    bound_e = 1.0 / jnp.sqrt(IN_DIM)
    bound_d = 1.0 / jnp.sqrt(HIDDEN_DIM)
    w_enc = jax.random.uniform(k1, (HIDDEN_DIM, IN_DIM), jnp.float32, -bound_e, bound_e)
    b_enc = jax.random.uniform(k2, (HIDDEN_DIM,), jnp.float32, -bound_e, bound_e)
    w_dec = jax.random.uniform(k3, (IN_DIM, HIDDEN_DIM), jnp.float32, -bound_d, bound_d)
    b_dec = jax.random.uniform(k4, (IN_DIM,), jnp.float32, -bound_d, bound_d)
    return w_enc, b_enc, w_dec, b_dec


if __name__ == "__main__":
    key = jax.random.PRNGKey(0)
    kx, kp = jax.random.split(key)

    # Small MNIST-like input: batch=8, 1x28x28 images (flattened to 784 inside).
    x = jax.random.normal(kx, (8, 1, 28, 28), dtype=jnp.float32)
    w_enc, b_enc, w_dec, b_dec = _init_params(kp)

    out = linear_autoencoder_forward(x, w_enc, b_enc, w_dec, b_dec)
    out = jax.block_until_ready(out)

    # Reference check in plain JAX (same semantics as the PyTorch module).
    x2d = x.reshape(-1, IN_DIM)
    ref = (x2d @ w_enc.T + b_enc) @ w_dec.T + b_dec
    assert out.shape == (8, IN_DIM)
    assert jnp.allclose(out, ref, atol=1e-4, rtol=1e-4)

    # Also exercise a non-tile-divisible batch to validate the cdiv/padding path.
    xb = jax.random.normal(kx, (37, 1, 28, 28), dtype=jnp.float32)
    outb = jax.block_until_ready(
        linear_autoencoder_forward(xb, w_enc, b_enc, w_dec, b_dec, batch_tile=256))
    refb = (xb.reshape(-1, IN_DIM) @ w_enc.T + b_enc) @ w_dec.T + b_dec
    assert outb.shape == (37, IN_DIM)
    assert jnp.allclose(outb, refb, atol=1e-4, rtol=1e-4)

    print("KERNEL_OK")
</pallas_src>

<mosaic_0001>
module attributes {stable_mosaic.version = 11 : i64} {
  func.func @_autoencoder_kernel(%arg0: i32, %arg1: memref<8x784xf32, #tpu.memory_space<vmem>>, %arg2: memref<64x784xf32, #tpu.memory_space<vmem>>, %arg3: memref<1x64xf32, #tpu.memory_space<vmem>>, %arg4: memref<784x64xf32, #tpu.memory_space<vmem>>, %arg5: memref<1x784xf32, #tpu.memory_space<vmem>>, %arg6: memref<8x784xf32, #tpu.memory_space<vmem>>) attributes {dimension_semantics = [#tpu.dimension_semantics<parallel>], iteration_bounds = array<i64: 1>, scalar_prefetch = 0 : i64, scratch_operands = 0 : i64, tpu.core_type = #tpu.core_type<tc>, window_params = [{transform_indices = @transform_0, window_bounds = array<i64: 8, 784>}, {pipeline_mode = #tpu.pipeline_mode<synchronous>, transform_indices = @transform_1, window_bounds = array<i64: 64, 784>}, {pipeline_mode = #tpu.pipeline_mode<synchronous>, transform_indices = @transform_2, window_bounds = array<i64: 1, 64>}, {pipeline_mode = #tpu.pipeline_mode<synchronous>, transform_indices = @transform_3, window_bounds = array<i64: 784, 64>}, {pipeline_mode = #tpu.pipeline_mode<synchronous>, transform_indices = @transform_4, window_bounds = array<i64: 1, 784>}, {transform_indices = @transform_5, window_bounds = array<i64: 8, 784>}]} {
    %c0 = arith.constant 0 : index
    %c0_0 = arith.constant 0 : index
    %0 = vector.load %arg1[%c0, %c0_0] : memref<8x784xf32, #tpu.memory_space<vmem>>, vector<8x784xf32>
    %c0_1 = arith.constant 0 : index
    %c0_2 = arith.constant 0 : index
    %1 = vector.load %arg2[%c0_1, %c0_2] : memref<64x784xf32, #tpu.memory_space<vmem>>, vector<64x784xf32>
    %c0_3 = arith.constant 0 : index
    %c0_4 = arith.constant 0 : index
    %2 = vector.load %arg4[%c0_3, %c0_4] : memref<784x64xf32, #tpu.memory_space<vmem>>, vector<784x64xf32>
    %cst = arith.constant dense<0.000000e+00> : vector<8x64xf32>
    %3 = tpu.matmul %0, %1, %cst {dimension_numbers = #tpu.dot_dimension_numbers<[1], [1], [0], [0], [0, 0, 1, 0], [], []>} : vector<8x784xf32>, vector<64x784xf32>, vector<8x64xf32> -> vector<8x64xf32>
    %c0_5 = arith.constant 0 : index
    %c0_6 = arith.constant 0 : index
    %4 = vector.load %arg3[%c0_5, %c0_6] : memref<1x64xf32, #tpu.memory_space<vmem>>, vector<1x64xf32>
    %5 = vector.broadcast %4 : vector<1x64xf32> to vector<8x64xf32>
    %6 = arith.addf %3, %5 : vector<8x64xf32>
    %cst_7 = arith.constant dense<0.000000e+00> : vector<8x784xf32>
    %7 = tpu.matmul %6, %2, %cst_7 {dimension_numbers = #tpu.dot_dimension_numbers<[1], [1], [0], [0], [0, 0, 1, 0], [], []>} : vector<8x64xf32>, vector<784x64xf32>, vector<8x784xf32> -> vector<8x784xf32>
    %c0_8 = arith.constant 0 : index
    %c0_9 = arith.constant 0 : index
    %8 = vector.load %arg5[%c0_8, %c0_9] : memref<1x784xf32, #tpu.memory_space<vmem>>, vector<1x784xf32>
    %9 = vector.broadcast %8 : vector<1x784xf32> to vector<8x784xf32>
    %10 = arith.addf %7, %9 : vector<8x784xf32>
    %c0_10 = arith.constant 0 : index
    %c0_11 = arith.constant 0 : index
    %11 = vector.load %arg6[%c0_10, %c0_11] : memref<8x784xf32, #tpu.memory_space<vmem>>, vector<8x784xf32>
    tpu.vector_store %arg6[%c0_10, %c0_11], %10 {strides = array<i32>} : memref<8x784xf32, #tpu.memory_space<vmem>>, vector<8x784xf32>,
    return
  }
  func.func @transform_0(%arg0: i32) -> (i32, i32) {
    %c0_i32 = arith.constant 0 : i32
    %c0_i32_0 = arith.constant 0 : i32
    return %arg0, %c0_i32 : i32, i32
  }
  func.func @transform_1(%arg0: i32) -> (i32, i32) {
    %c0_i32 = arith.constant 0 : i32
    %c0_i32_0 = arith.constant 0 : i32
    %c0_i32_1 = arith.constant 0 : i32
    return %c0_i32, %c0_i32_0 : i32, i32
  }
  func.func @transform_2(%arg0: i32) -> (i32, i32) {
    %c0_i32 = arith.constant 0 : i32
    %c0_i32_0 = arith.constant 0 : i32
    %c0_i32_1 = arith.constant 0 : i32
    return %c0_i32, %c0_i32_0 : i32, i32
  }
  func.func @transform_3(%arg0: i32) -> (i32, i32) {
    %c0_i32 = arith.constant 0 : i32
    %c0_i32_0 = arith.constant 0 : i32
    %c0_i32_1 = arith.constant 0 : i32
    return %c0_i32, %c0_i32_0 : i32, i32
  }
  func.func @transform_4(%arg0: i32) -> (i32, i32) {
    %c0_i32 = arith.constant 0 : i32
    %c0_i32_0 = arith.constant 0 : i32
    %c0_i32_1 = arith.constant 0 : i32
    return %c0_i32, %c0_i32_0 : i32, i32
  }
  func.func @transform_5(%arg0: i32) -> (i32, i32) {
    %c0_i32 = arith.constant 0 : i32
    %c0_i32_0 = arith.constant 0 : i32
    return %arg0, %c0_i32 : i32, i32
  }
}

</mosaic_0001>

<bundles_post_ra>
// kernel: tpu_custom_call.1
= control target key start
LH: loop header
LB: loop body
LE: loop exit
PB: predicated region body
PF: predicated region fallthrough
CT: control target
= control target key end

     0   :  { %s1611_s0 = inlined_call_operand.vmem [shape: f32[8,784], index: 0, kind: input, shape index: {}]   ;;  %s1612_s1 = inlined_call_operand.vmem [shape: f32[64,784], index: 1, kind: input, shape index: {}]   ;;  %s1613_s2 = inlined_call_operand.vmem [shape: f32[1,64], index: 2, kind: input, shape index: {}]   ;;  %s1614_s3 = inlined_call_operand.vmem [shape: f32[784,64], index: 3, kind: input, shape index: {}]   ;;  %s1615_s4 = inlined_call_operand.vmem [shape: f32[1,784], index: 4, kind: input, shape index: {}]   ;;  %s1616_s5 = inlined_call_operand.hbm [shape: f32[8,784], index: 5, kind: output, shape index: {}]  }
   0x1   :  { %v77_v0 = vld [vmem:[%s1612_s1 + $0x188] sm:$0xff]  ;;  %v78_v1 = vld [vmem:[%s1612_s1 + $0x190] sm:$0xff]  ;;  %v71_v3 = vld [vmem:[%s1612_s1 + $0x158] sm:$0xff] }
   0x2   :  { %222 = vmatpush.xpose.msra.mxu2 %v77_v0  ;;  %v70_v2 = vld [vmem:[%s1612_s1 + $0x150] sm:$0xff]  ;;  %242 = vmatpush.xpose.msra.mxu1 %v78_v1  ;;  %v80_v4 = vld [vmem:[%s1612_s1 + $0x1a0] sm:$0xff]  ;;  %v63_v5 = vld [vmem:[%s1612_s1 + $0x118] sm:$0xff] }
   0x3   :  { %v64_v6 = vld [vmem:[%s1612_s1 + $0x120] sm:$0xff]  ;;  %282 = vmatpush.xpose.msra.mxu3 %v80_v4  ;;  %v73_v7 = vld [vmem:[%s1612_s1 + $0x168] sm:$0xff] }
   0x6   :  { %223 = vmatpush.xpose.msra.mxu2 %v70_v2  ;;  %243 = vmatpush.xpose.msra.mxu1 %v71_v3 }
   0x7   :  { %10 = vsyncpa [#allocation3], 0  ;;  %v81_v8 = vld [vmem:[%s1612_s1 + $0x1a8] sm:$0xff]  ;;  %v56_v9 = vld [vmem:[%s1612_s1 + $0xe0] sm:$0xff]  ;;  %283 = vmatpush.xpose.msra.mxu3 %v73_v7  ;;  %vm186_vm0 = vcmask 130048   ;;  %vm370_vm1 = vcmask 523264  }
   0x8   :  { %v57_v10 = vld [vmem:[%s1612_s1 + $0xe8] sm:$0xff]  ;;  %v66_v11 = vld [vmem:[%s1612_s1 + $0x130] sm:$0xff]  ;;  %302 = vmatpush.xpose.msra.mxu0 %v81_v8  ;;  %v59_v15 = vld [vmem:[%s1612_s1 + $0xf8] sm:$0xff]  ;;  %s822_s7 = sshll.u32 %s1616_s5, 4  ;;  %s823_s7 = int_to_ptr.hbm [resolvable:$true] %s822_s7 }
   0x9   :  { %v74_v12 = vld [vmem:[%s1612_s1 + $0x170] sm:$0xff]  ;;  %v49_v13 = vld [vmem:[%s1612_s1 + $0xa8] sm:$0xff]  ;;  %v67_v16 = vld [vmem:[%s1612_s1 + $0x138] sm:$0xff] }
   0xa   :  { %224 = vmatpush.xpose.msra.mxu2 %v63_v5  ;;  %244 = vmatpush.xpose.msra.mxu1 %v64_v6  ;;  %v50_v14 = vld [vmem:[%s1612_s1 + $0xb0] sm:$0xff]  ;;  %v43_v18 = vld [vmem:[%s1612_s1 + $0x78] sm:$0xff]  ;;  %v52_v19 = vld [vmem:[%s1612_s1 + $0xc0] sm:$0xff] }
   0xb   :  { %284 = vmatpush.xpose.msra.mxu3 %v66_v11  ;;  %v42_v17 = vld [vmem:[%s1612_s1 + $0x70] sm:$0xff]  ;;  %v60_v20 = vld [vmem:[%s1612_s1 + $0x100] sm:$0xff]  ;;  %v35_v21 = vld [vmem:[%s1612_s1 + $0x38] sm:$0xff] }
   0xc   :  { %303 = vmatpush.xpose.msra.mxu0 %v74_v12  ;;  %v36_v22 = vld [vmem:[%s1612_s1 + $0x40] sm:$0xff]  ;;  %v45_v23 = vld [vmem:[%s1612_s1 + $0x88] sm:$0xff]  ;;  %v79_v26 = vld [vmem:[%s1612_s1 + $0x198] sm:$0xff] }
   0xd   :  { %v53_v24 = vld [vmem:[%s1612_s1 + $0xc8] sm:$0xff]  ;;  %v28_v25 = vld [vmem:[%s1612_s1] sm:$0xff]  ;;  %v82_v28 = vld [vmem:[%s1612_s1 + $0x1b0] sm:$0xff] }
   0xe   :  { %225 = vmatpush.xpose.msra.mxu2 %v56_v9  ;;  %245 = vmatpush.xpose.msra.mxu1 %v57_v10  ;;  %v29_v27 = vld [vmem:[%s1612_s1 + $0x8] sm:$0xff]  ;;  %v38_v29 = vld [vmem:[%s1612_s1 + $0x50] sm:$0xff]  ;;  %v21_v30 = vld [vmem:[%s1611_s0] sm:$0xff] }
   0xf   :  { %285 = vmatpush.xpose.msra.mxu3 %v59_v15  ;;  %v46_v31 = vld [vmem:[%s1612_s1 + $0x90] sm:$0xff]  ;;  %v72_v32 = vld [vmem:[%s1612_s1 + $0x160] sm:$0xff]  ;;  %v75_v33 = vld [vmem:[%s1612_s1 + $0x178] sm:$0xff] }
  0x10   :  { %304 = vmatpush.xpose.msra.mxu0 %v67_v16  ;;  %v31_v34 = vld [vmem:[%s1612_s1 + $0x18] sm:$0xff]  ;;  %v22_v35 = vld [vmem:[%s1611_s0 + $0x8] sm:$0xff]  ;;  %v68_v39 = vld [vmem:[%s1612_s1 + $0x140] sm:$0xff] }
  0x11   :  { %v39_v36 = vld [vmem:[%s1612_s1 + $0x58] sm:$0xff]  ;;  %v65_v37 = vld [vmem:[%s1612_s1 + $0x128] sm:$0xff]  ;;  %v32_v40 = vld [vmem:[%s1612_s1 + $0x20] sm:$0xff] }
  0x12   :  { %226 = vmatpush.xpose.msra.mxu2 %v49_v13  ;;  %246 = vmatpush.xpose.msra.mxu1 %v50_v14  ;;  %v24_v38 = vld [vmem:[%s1611_s0 + $0x18] sm:$0xff]  ;;  %v58_v41 = vld [vmem:[%s1612_s1 + $0xf0] sm:$0xff]  ;;  %v61_v42 = vld [vmem:[%s1612_s1 + $0x108] sm:$0xff] }
  0x13   :  { %286 = vmatpush.xpose.msra.mxu3 %v52_v19  ;;  %v25_v43 = vld [vmem:[%s1611_s0 + $0x20] sm:$0xff]  ;;  %v51_v44 = vld [vmem:[%s1612_s1 + $0xb8] sm:$0xff]  ;;  %v54_v45 = vld [vmem:[%s1612_s1 + $0xd0] sm:$0xff] }
  0x14   :  { %305 = vmatpush.xpose.msra.mxu0 %v60_v20  ;;  %v44_v46 = vld [vmem:[%s1612_s1 + $0x80] sm:$0xff]  ;;  %v47_v47 = vld [vmem:[%s1612_s1 + $0x98] sm:$0xff]  ;;  %v37_v48 = vld [vmem:[%s1612_s1 + $0x48] sm:$0xff] }
  0x15   :  { %v40_v49 = vld [vmem:[%s1612_s1 + $0x60] sm:$0xff]  ;;  %v30_v50 = vld [vmem:[%s1612_s1 + $0x10] sm:$0xff]  ;;  %v83_v51 = vld [vmem:[%s1612_s1 + $0x1b8] sm:$0xff] }
  0x16   :  { %227 = vmatpush.xpose.msra.mxu2 %v42_v17  ;;  %247 = vmatpush.xpose.msra.mxu1 %v43_v18  ;;  %v33_v52 = vld [vmem:[%s1612_s1 + $0x28] sm:$0xff]  ;;  %v23_v53 = vld [vmem:[%s1611_s0 + $0x10] sm:$0xff]  ;;  %v99_v54 = vld [vmem:[%s1614_s3 + $0x78] sm:$0xff] }
  0x17   :  { %287 = vmatpush.xpose.msra.mxu3 %v45_v23  ;;  %v115_v55 = vld [vmem:[%s1614_s3 + $0xf8] sm:$0xff]  ;;  %v26_v56 = vld [vmem:[%s1611_s0 + $0x28] sm:$0xff]  ;;  %v76_v57 = vld [vmem:[%s1612_s1 + $0x180] sm:$0xff] }
  0x18   :  { %306 = vmatpush.xpose.msra.mxu0 %v53_v24  ;;  %v98_v58 = vld [vmem:[%s1614_s3 + $0x70] sm:$0xff]  ;;  %v69_v60 = vld [vmem:[%s1612_s1 + $0x148] sm:$0xff]  ;;  %v96_v0 = vld [vmem:[%s1614_s3 + $0x60] sm:$0xff] }
  0x19   :  { %v114_v59 = vld [vmem:[%s1614_s3 + $0xf0] sm:$0xff]  ;;  %v97_v61 = vld [vmem:[%s1614_s3 + $0x68] sm:$0xff]  ;;  %v112_v1 = vld [vmem:[%s1614_s3 + $0xe0] sm:$0xff] }
  0x1a   :  { %228 = vmatpush.xpose.msra.mxu2 %v35_v21  ;;  %248 = vmatpush.xpose.msra.mxu1 %v36_v22  ;;  %v113_v62 = vld [vmem:[%s1614_s3 + $0xe8] sm:$0xff]  ;;  %v62_v63 = vld [vmem:[%s1612_s1 + $0x110] sm:$0xff]  ;;  %v55_v2 = vld [vmem:[%s1612_s1 + $0xd8] sm:$0xff] }
  0x1b   :  { %288 = vmatpush.xpose.msra.mxu3 %v38_v29  ;;  %v95_v3 = vld [vmem:[%s1614_s3 + $0x58] sm:$0xff]  ;;  %v48_v5 = vld [vmem:[%s1612_s1 + $0xa0] sm:$0xff]  ;;  %v94_v6 = vld [vmem:[%s1614_s3 + $0x50] sm:$0xff] }
  0x1c   :  { %307 = vmatpush.xpose.msra.mxu0 %v46_v31  ;;  %v111_v4 = vld [vmem:[%s1614_s3 + $0xd8] sm:$0xff]  ;;  %v110_v7 = vld [vmem:[%s1614_s3 + $0xd0] sm:$0xff]  ;;  %v41_v8 = vld [vmem:[%s1612_s1 + $0x68] sm:$0xff] }
  0x1d   :  { %v131_v9 = vld [vmem:[%s1614_s3 + $0x178] sm:$0xff]  ;;  %v93_v10 = vld [vmem:[%s1614_s3 + $0x48] sm:$0xff]  ;;  %v34_v12 = vld [vmem:[%s1612_s1 + $0x30] sm:$0xff] }
  0x1e   :  { %229 = vmatpush.xpose.msra.mxu2 %v28_v25  ;;  %249 = vmatpush.xpose.msra.mxu1 %v29_v27  ;;  %v109_v11 = vld [vmem:[%s1614_s3 + $0xc8] sm:$0xff]  ;;  %v130_v13 = vld [vmem:[%s1614_s3 + $0x170] sm:$0xff]  ;;  %v92_v14 = vld [vmem:[%s1614_s3 + $0x40] sm:$0xff] }
  0x1f   :  { %289 = vmatpush.xpose.msra.mxu3 %v31_v34  ;;  %v108_v15 = vld [vmem:[%s1614_s3 + $0xc0] sm:$0xff]  ;;  %v147_v16 = vld [vmem:[%s1614_s3 + $0x1f8] sm:$0xff]  ;;  %v27_v17 = vld [vmem:[%s1611_s0 + $0x30] sm:$0xff] }
  0x20   :  { %308 = vmatpush.xpose.msra.mxu0 %v39_v36  ;;  %v129_v18 = vld [vmem:[%s1614_s3 + $0x168] sm:$0xff]  ;;  %v91_v19 = vld [vmem:[%s1614_s3 + $0x38] sm:$0xff]  ;;  %v146_v21 = vld [vmem:[%s1614_s3 + $0x1f0] sm:$0xff] }
  0x21   :  { %230 = vmatmul.f32.vlgmr.msra.gmra.mxu2 %v21_v30  ;;  %250 = vmatmul.f32.vlgmr.msra.gmra.mxu1 %v22_v35  ;;  %v107_v20 = vld [vmem:[%s1614_s3 + $0xb8] sm:$0xff]  ;;  %v128_v22 = vld [vmem:[%s1614_s3 + $0x160] sm:$0xff]  ;;  %v90_v23 = vld [vmem:[%s1614_s3 + $0x30] sm:$0xff] }
  0x22   :  { %262 = vmatpush.xpose.msrb.mxu2 %v79_v26  ;;  %322 = vmatpush.xpose.msrb.mxu1 %v82_v28  ;;  %v106_v24 = vld [vmem:[%s1614_s3 + $0xb0] sm:$0xff]  ;;  %v145_v25 = vld [vmem:[%s1614_s3 + $0x1e8] sm:$0xff]  ;;  %v127_v26 = vld [vmem:[%s1614_s3 + $0x158] sm:$0xff] }
  0x23   :  { %290 = vmatmul.f32.vlgmr.msra.gmra.mxu3 %v24_v38  ;;  %v89_v27 = vld [vmem:[%s1614_s3 + $0x28] sm:$0xff]  ;;  %v144_v29 = vld [vmem:[%s1614_s3 + $0x1e0] sm:$0xff]  ;;  %v126_v30 = vld [vmem:[%s1614_s3 + $0x150] sm:$0xff] }
  0x24   :  { %309 = vmatpush.xpose.msra.mxu0 %v32_v40  ;;  %840 = vmatpush.xpose.msk.msrb.mxu3 %vm370_vm1, %v99_v54  ;;  %v105_v28 = vld [vmem:[%s1614_s3 + $0xa8] sm:$0xff]  ;;  %v88_v31 = vld [vmem:[%s1614_s3 + $0x20] sm:$0xff]  ;;  %v87_v35 = vld [vmem:[%s1614_s3 + $0x18] sm:$0xff] }
  0x25   :  { %v125_v34 = vld [vmem:[%s1614_s3 + $0x148] sm:$0xff]  ;;  %v103_v36 = vld [vmem:[%s1614_s3 + $0x98] sm:$0xff]  ;;  %v86_v38 = vld [vmem:[%s1614_s3 + $0x10] sm:$0xff] }
  0x26   :  { %263 = vmatpush.xpose.msrb.mxu2 %v72_v32  ;;  %323 = vmatpush.xpose.msrb.mxu1 %v75_v33  ;;  %v104_v32 = vld [vmem:[%s1614_s3 + $0xa0] sm:$0xff]  ;;  %v143_v33 = vld [vmem:[%s1614_s3 + $0x1d8] sm:$0xff]  ;;  %v141_v40 = vld [vmem:[%s1614_s3 + $0x1c8] sm:$0xff] }
  0x27   :  { %310 = vmatmul.f32.vlgmr.msra.gmra.mxu0 %v25_v43  ;;  %v84_v43 = vld [vmem:[%s1614_s3] sm:$0xff] }
  0x28   :  { %857 = vmatpush.xpose.msk.msrb.mxu0 %vm370_vm1, %v115_v55  ;;  %841 = vmatpush.xpose.msk.msrb.mxu3 %vm370_vm1, %v98_v58  ;;  %v140_v54 = vld [vmem:[%s1614_s3 + $0x1c0] sm:$0xff]  ;;  %v159_v55 = vld [vmem:[%s1614_s3 + $0x258] sm:$0xff] }
  0x29   :  { %v139_v58 = vld [vmem:[%s1614_s3 + $0x1b8] sm:$0xff] }
  0x2a   :  { %264 = vmatpush.xpose.msrb.mxu2 %v65_v37  ;;  %324 = vmatpush.xpose.msrb.mxu1 %v68_v39  ;;  %v142_v37 = vld [vmem:[%s1614_s3 + $0x1d0] sm:$0xff] }
  0x2b   :  { %v102_v39 = vld [vmem:[%s1614_s3 + $0x90] sm:$0xff] }
  0x2c   :  { %858 = vmatpush.xpose.msk.msrb.mxu0 %vm370_vm1, %v114_v59  ;;  %842 = vmatpush.xpose.msk.msrb.mxu3 %vm370_vm1, %v97_v61  ;;  %v158_v59 = vld [vmem:[%s1614_s3 + $0x250] sm:$0xff]  ;;  %v157_v61 = vld [vmem:[%s1614_s3 + $0x248] sm:$0xff] }
  0x2e   :  { %265 = vmatpush.xpose.msrb.mxu2 %v58_v41  ;;  %325 = vmatpush.xpose.msrb.mxu1 %v61_v42  ;;  %v85_v41 = vld [vmem:[%s1614_s3 + $0x8] sm:$0xff] }
  0x2f   :  { %v101_v42 = vld [vmem:[%s1614_s3 + $0x88] sm:$0xff] }
  0x30   :  { %859 = vmatpush.xpose.msk.msrb.mxu0 %vm370_vm1, %v113_v62  ;;  %843 = vmatpush.xpose.msk.msrb.mxu3 %vm370_vm1, %v96_v0  ;;  %v173_v62 = vld [vmem:[%s1614_s3 + $0x2c8] sm:$0xff]  ;;  %v138_v0 = vld [vmem:[%s1614_s3 + $0x1b0] sm:$0xff] }
  0x32   :  { %266 = vmatpush.xpose.msrb.mxu2 %v51_v44  ;;  %326 = vmatpush.xpose.msrb.mxu1 %v54_v45  ;;  %v100_v44 = vld [vmem:[%s1614_s3 + $0x80] sm:$0xff]  ;;  %v163_v45 = vld [vmem:[%s1614_s3 + $0x278] sm:$0xff] }
  0x34   :  { %860 = vmatpush.xpose.msk.msrb.mxu0 %vm370_vm1, %v112_v1  ;;  %844 = vmatpush.xpose.msk.msrb.mxu3 %vm370_vm1, %v95_v3  ;;  %v156_v1 = vld [vmem:[%s1614_s3 + $0x240] sm:$0xff]  ;;  %v121_v3 = vld [vmem:[%s1614_s3 + $0x128] sm:$0xff] }
  0x36   :  { %267 = vmatpush.xpose.msrb.mxu2 %v44_v46  ;;  %327 = vmatpush.xpose.msrb.mxu1 %v47_v47  ;;  %v179_v46 = vld [vmem:[%s1614_s3 + $0x2f8] sm:$0xff]  ;;  %v162_v47 = vld [vmem:[%s1614_s3 + $0x270] sm:$0xff] }
  0x38   :  { %861 = vmatpush.xpose.msk.msrb.mxu0 %vm370_vm1, %v111_v4  ;;  %845 = vmatpush.xpose.msk.msrb.mxu3 %vm370_vm1, %v94_v6  ;;  %v137_v4 = vld [vmem:[%s1614_s3 + $0x1a8] sm:$0xff]  ;;  %v171_v6 = vld [vmem:[%s1614_s3 + $0x2b8] sm:$0xff] }
  0x3a   :  { %268 = vmatpush.xpose.msrb.mxu2 %v37_v48  ;;  %328 = vmatpush.xpose.msrb.mxu1 %v40_v49  ;;  %v178_v48 = vld [vmem:[%s1614_s3 + $0x2f0] sm:$0xff]  ;;  %v161_v49 = vld [vmem:[%s1614_s3 + $0x268] sm:$0xff] }
  0x3c   :  { %862 = vmatpush.xpose.msk.msrb.mxu0 %vm370_vm1, %v110_v7  ;;  %846 = vmatpush.xpose.msk.msrb.mxu3 %vm370_vm1, %v93_v10  ;;  %v120_v7 = vld [vmem:[%s1614_s3 + $0x120] sm:$0xff]  ;;  %v170_v10 = vld [vmem:[%s1614_s3 + $0x2b0] sm:$0xff] }
  0x3e   :  { %269 = vmatpush.xpose.msrb.mxu2 %v30_v50  ;;  %329 = vmatpush.xpose.msrb.mxu1 %v33_v52  ;;  %v177_v50 = vld [vmem:[%s1614_s3 + $0x2e8] sm:$0xff]  ;;  %v176_v52 = vld [vmem:[%s1614_s3 + $0x2e0] sm:$0xff] }
  0x40   :  { %863 = vmatpush.xpose.msk.msrb.mxu0 %vm370_vm1, %v109_v11  ;;  %847 = vmatpush.xpose.msk.msrb.mxu3 %vm370_vm1, %v92_v14  ;;  %v119_v11 = vld [vmem:[%s1614_s3 + $0x118] sm:$0xff]  ;;  %v169_v14 = vld [vmem:[%s1614_s3 + $0x2a8] sm:$0xff] }
  0x41   :  { %270 = vmatmul.f32.vlgmr.msrb.gmra.mxu2 %v23_v53  ;;  %330 = vmatmul.f32.vlgmr.msrb.gmra.mxu1 %v26_v56  ;;  %v124_v53 = vld [vmem:[%s1614_s3 + $0x140] sm:$0xff]  ;;  %v175_v56 = vld [vmem:[%s1614_s3 + $0x2d8] sm:$0xff] }
  0x42   :  { %831 = vmatpush.xpose.msk.msra.mxu2 %vm186_vm0, %v83_v51  ;;  %874 = vmatpush.xpose.msk.msra.mxu1 %vm370_vm1, %v131_v9  ;;  %v160_v51 = vld [vmem:[%s1614_s3 + $0x260] sm:$0xff]  ;;  %v154_v9 = vld [vmem:[%s1614_s3 + $0x230] sm:$0xff] }
  0x44   :  { %864 = vmatpush.xpose.msk.msrb.mxu0 %vm370_vm1, %v108_v15  ;;  %848 = vmatpush.xpose.msk.msrb.mxu3 %vm370_vm1, %v91_v19  ;;  %v118_v15 = vld [vmem:[%s1614_s3 + $0x110] sm:$0xff]  ;;  %v117_v19 = vld [vmem:[%s1614_s3 + $0x108] sm:$0xff] }
  0x46   :  { %832 = vmatpush.xpose.msk.msra.mxu2 %vm186_vm0, %v76_v57  ;;  %875 = vmatpush.xpose.msk.msra.mxu1 %vm370_vm1, %v130_v13  ;;  %v123_v57 = vld [vmem:[%s1614_s3 + $0x138] sm:$0xff]  ;;  %v153_v13 = vld [vmem:[%s1614_s3 + $0x228] sm:$0xff] }
  0x48   :  { %865 = vmatpush.xpose.msk.msrb.mxu0 %vm370_vm1, %v107_v20  ;;  %849 = vmatpush.xpose.msk.msrb.mxu3 %vm370_vm1, %v90_v23  ;;  %v133_v20 = vld [vmem:[%s1614_s3 + $0x188] sm:$0xff]  ;;  %v116_v23 = vld [vmem:[%s1614_s3 + $0x100] sm:$0xff] }
  0x4a   :  { %833 = vmatpush.xpose.msk.msra.mxu2 %vm186_vm0, %v69_v60  ;;  %876 = vmatpush.xpose.msk.msra.mxu1 %vm370_vm1, %v129_v18  ;;  %v174_v60 = vld [vmem:[%s1614_s3 + $0x2d0] sm:$0xff]  ;;  %v168_v18 = vld [vmem:[%s1614_s3 + $0x2a0] sm:$0xff] }
  0x4c   :  { %866 = vmatpush.xpose.msk.msrb.mxu0 %vm370_vm1, %v106_v24  ;;  %850 = vmatpush.xpose.msk.msrb.mxu3 %vm370_vm1, %v89_v27  ;;  %v132_v24 = vld [vmem:[%s1614_s3 + $0x180] sm:$0xff]  ;;  %v149_v27 = vld [vmem:[%s1614_s3 + $0x208] sm:$0xff] }
  0x4e   :  { %834 = vmatpush.xpose.msk.msra.mxu2 %vm186_vm0, %v62_v63  ;;  %877 = vmatpush.xpose.msk.msra.mxu1 %vm370_vm1, %v128_v22  ;;  %v122_v63 = vld [vmem:[%s1614_s3 + $0x130] sm:$0xff]  ;;  %v167_v22 = vld [vmem:[%s1614_s3 + $0x298] sm:$0xff] }
  0x50   :  { %867 = vmatpush.xpose.msk.msrb.mxu0 %vm370_vm1, %v105_v28  ;;  %851 = vmatpush.xpose.msk.msrb.mxu3 %vm370_vm1, %v88_v31  ;;  %v165_v28 = vld [vmem:[%s1614_s3 + $0x288] sm:$0xff]  ;;  %v148_v31 = vld [vmem:[%s1614_s3 + $0x200] sm:$0xff] }
  0x52   :  { %835 = vmatpush.xpose.msk.msra.mxu2 %vm186_vm0, %v55_v2  ;;  %878 = vmatpush.xpose.msk.msra.mxu1 %vm370_vm1, %v127_v26  ;;  %v172_v2 = vld [vmem:[%s1614_s3 + $0x2c0] sm:$0xff]  ;;  %v166_v26 = vld [vmem:[%s1614_s3 + $0x290] sm:$0xff] }
  0x54   :  { %868 = vmatpush.xpose.msk.msrb.mxu0 %vm370_vm1, %v104_v32  ;;  %852 = vmatpush.xpose.msk.msrb.mxu3 %vm370_vm1, %v87_v35  ;;  %v164_v32 = vld [vmem:[%s1614_s3 + $0x280] sm:$0xff] }
  0x56   :  { %836 = vmatpush.xpose.msk.msra.mxu2 %vm186_vm0, %v48_v5  ;;  %879 = vmatpush.xpose.msk.msra.mxu1 %vm370_vm1, %v126_v30  ;;  %v155_v5 = vld [vmem:[%s1614_s3 + $0x238] sm:$0xff] }
  0x58   :  { %869 = vmatpush.xpose.msk.msrb.mxu0 %vm370_vm1, %v103_v36  ;;  %853 = vmatpush.xpose.msk.msrb.mxu3 %vm370_vm1, %v86_v38 }
  0x5a   :  { %837 = vmatpush.xpose.msk.msra.mxu2 %vm186_vm0, %v41_v8  ;;  %880 = vmatpush.xpose.msk.msra.mxu1 %vm370_vm1, %v125_v34  ;;  %v136_v8 = vld [vmem:[%s1614_s3 + $0x1a0] sm:$0xff] }
  0x5b   :  { %v180_v34 = vld [vmem:[%s1614_s3 + $0x300] sm:$0xff] }
  0x5c   :  { %870 = vmatpush.xpose.msk.msrb.mxu0 %vm370_vm1, %v102_v39  ;;  %854 = vmatpush.xpose.msk.msrb.mxu3 %vm370_vm1, %v85_v41 }
  0x5e   :  { %838 = vmatpush.xpose.msk.msra.mxu2 %vm186_vm0, %v34_v12  ;;  %881 = vmatpush.xpose.msk.msra.mxu1 %vm370_vm1, %v124_v53  ;;  %v135_v12 = vld [vmem:[%s1614_s3 + $0x198] sm:$0xff] }
  0x60   :  { %871 = vmatpush.xpose.msk.msrb.mxu0 %vm370_vm1, %v101_v42  ;;  %855 = vmatpush.xpose.msk.msrb.mxu3 %vm370_vm1, %v84_v43 }
  0x61   :  { %839 = vmatmul.msk.f32.vlgmr.msra.gmra.mxu2 %vm186_vm0, %v27_v17  ;;  %v152_v17 = vld [vmem:[%s1614_s3 + $0x220] sm:$0xff] }
  0x62   :  { %891 = vmatpush.xpose.msk.msrb.mxu2 %vm370_vm1, %v147_v16  ;;  %882 = vmatpush.xpose.msk.msra.mxu1 %vm370_vm1, %v123_v57  ;;  %v134_v16 = vld [vmem:[%s1614_s3 + $0x190] sm:$0xff] }
  0x64   :  { %872 = vmatpush.xpose.msk.msrb.mxu0 %vm370_vm1, %v100_v44  ;;  %908 = vmatpush.xpose.msk.msra.mxu3 %vm370_vm1, %v163_v45 }
  0x66   :  { %892 = vmatpush.xpose.msk.msrb.mxu2 %vm370_vm1, %v146_v21  ;;  %883 = vmatpush.xpose.msk.msra.mxu1 %vm370_vm1, %v122_v63  ;;  %v151_v21 = vld [vmem:[%s1614_s3 + $0x218] sm:$0xff] }
  0x68   :  { %925 = vmatpush.xpose.msk.msra.mxu0 %vm370_vm1, %v179_v46  ;;  %909 = vmatpush.xpose.msk.msra.mxu3 %vm370_vm1, %v162_v47 }
  0x6a   :  { %893 = vmatpush.xpose.msk.msrb.mxu2 %vm370_vm1, %v145_v25  ;;  %884 = vmatpush.xpose.msk.msra.mxu1 %vm370_vm1, %v121_v3  ;;  %v150_v25 = vld [vmem:[%s1614_s3 + $0x210] sm:$0xff] }
  0x6c   :  { %926 = vmatpush.xpose.msk.msra.mxu0 %vm370_vm1, %v178_v48  ;;  %910 = vmatpush.xpose.msk.msra.mxu3 %vm370_vm1, %v161_v49  ;;  %v354_v48 = vld [vmem:[%s1615_s4] sm:$0x7f]  ;;  %s973_s4 = smov [#allocation2]  }
  0x6d   :  { %v357_v49 = vperm.slane %v354_v48, 1  ;;  %v361_v57 = vperm.slane %v354_v48, 5  ;;  %v360_v3 = vperm.slane %v354_v48, 4  ;;  %s820_s29 = sshll.u32 %s973_s4, 4  ;;  %s821_s29 = int_to_ptr.vmem [resolvable:$true] %s820_s29 }
  0x6e   :  { %894 = vmatpush.xpose.msk.msrb.mxu2 %vm370_vm1, %v144_v29  ;;  %885 = vmatpush.xpose.msk.msra.mxu1 %vm370_vm1, %v120_v7  ;;  %v181_v29 = vld [vmem:[%s1614_s3 + $0x308] sm:$0xff] }
  0x70   :  { %927 = vmatpush.xpose.msk.msra.mxu0 %vm370_vm1, %v177_v50  ;;  %911 = vmatpush.xpose.msk.msra.mxu3 %vm370_vm1, %v160_v51  ;;  %v358_v50 = vperm.slane %v354_v48, 2 }
  0x72   :  { %895 = vmatpush.xpose.msk.msrb.mxu2 %vm370_vm1, %v143_v33  ;;  %886 = vmatpush.xpose.msk.msra.mxu1 %vm370_vm1, %v119_v11  ;;  %v946_v33 = vld [vmem:[%s1613_s2] ss:$0 sm:$0xff] }
  0x74   :  { %928 = vmatpush.xpose.msk.msra.mxu0 %vm370_vm1, %v176_v52  ;;  %912 = vmatpush.xpose.msk.msra.mxu3 %vm370_vm1, %v159_v55  ;;  %v356_v55 = vperm.slane %v354_v48, 0 }
  0x76   :  { %896 = vmatpush.xpose.msk.msrb.mxu2 %vm370_vm1, %v142_v37  ;;  %887 = vmatpush.xpose.msk.msra.mxu1 %vm370_vm1, %v118_v15 }
  0x78   :  { %929 = vmatpush.xpose.msk.msra.mxu0 %vm370_vm1, %v175_v56  ;;  %913 = vmatpush.xpose.msk.msra.mxu3 %vm370_vm1, %v158_v59  ;;  %v359_v56 = vperm.slane %v354_v48, 3  ;;  %v362_v59 = vperm.slane %v354_v48, 6 }
  0x7a   :  { %897 = vmatpush.xpose.msk.msrb.mxu2 %vm370_vm1, %v141_v40  ;;  %888 = vmatpush.xpose.msk.msra.mxu1 %vm370_vm1, %v117_v19 }
  0x7c   :  { %930 = vmatpush.xpose.msk.msra.mxu0 %vm370_vm1, %v174_v60  ;;  %914 = vmatpush.xpose.msk.msra.mxu3 %vm370_vm1, %v157_v61 }
  0x7e   :  { %898 = vmatpush.xpose.msk.msrb.mxu2 %vm370_vm1, %v140_v54  ;;  %889 = vmatpush.xpose.msk.msra.mxu1 %vm370_vm1, %v116_v23 }
  0x80   :  { %931 = vmatpush.xpose.msk.msra.mxu0 %vm370_vm1, %v173_v62  ;;  %915 = vmatpush.xpose.msk.msra.mxu3 %vm370_vm1, %v156_v1 }
  0x82   :  { %899 = vmatpush.xpose.msk.msrb.mxu2 %vm370_vm1, %v139_v58  ;;  %942 = vmatpush.xpose.msk.msrb.mxu1 %vm370_vm1, %v181_v29 }
  0x84   :  { %932 = vmatpush.xpose.msk.msra.mxu0 %vm370_vm1, %v172_v2  ;;  %916 = vmatpush.xpose.msk.msra.mxu3 %vm370_vm1, %v155_v5 }
  0x86   :  { %900 = vmatpush.xpose.msk.msrb.mxu2 %vm370_vm1, %v138_v0  ;;  %943 = vmatpush.xpose.msk.msrb.mxu1 %vm370_vm1, %v180_v34 }
  0x88   :  { %933 = vmatpush.xpose.msk.msra.mxu0 %vm370_vm1, %v171_v6  ;;  %917 = vmatpush.xpose.msk.msra.mxu3 %vm370_vm1, %v154_v9 }
  0x8a   :  { %901 = vmatpush.xpose.msk.msrb.mxu2 %vm370_vm1, %v137_v4 }
  0x8c   :  { %934 = vmatpush.xpose.msk.msra.mxu0 %vm370_vm1, %v170_v10  ;;  %918 = vmatpush.xpose.msk.msra.mxu3 %vm370_vm1, %v153_v13 }
  0x8e   :  { %902 = vmatpush.xpose.msk.msrb.mxu2 %vm370_vm1, %v136_v8 }
  0x90   :  { %935 = vmatpush.xpose.msk.msra.mxu0 %vm370_vm1, %v169_v14  ;;  %919 = vmatpush.xpose.msk.msra.mxu3 %vm370_vm1, %v152_v17 }
  0x92   :  { %903 = vmatpush.xpose.msk.msrb.mxu2 %vm370_vm1, %v135_v12 }
  0x94   :  { %936 = vmatpush.xpose.msk.msra.mxu0 %vm370_vm1, %v168_v18  ;;  %920 = vmatpush.xpose.msk.msra.mxu3 %vm370_vm1, %v151_v21 }
  0x96   :  { %904 = vmatpush.xpose.msk.msrb.mxu2 %vm370_vm1, %v134_v16 }
  0x98   :  { %937 = vmatpush.xpose.msk.msra.mxu0 %vm370_vm1, %v167_v22  ;;  %921 = vmatpush.xpose.msk.msra.mxu3 %vm370_vm1, %v150_v25 }
  0x9a   :  { %905 = vmatpush.xpose.msk.msrb.mxu2 %vm370_vm1, %v133_v20 }
  0x9c   :  { %938 = vmatpush.xpose.msk.msra.mxu0 %vm370_vm1, %v166_v26  ;;  %922 = vmatpush.xpose.msk.msra.mxu3 %vm370_vm1, %v149_v27 }
  0x9e   :  { %906 = vmatpush.xpose.msk.msrb.mxu2 %vm370_vm1, %v132_v24  ;;  %v251_v36 = vpop.f32.mrf.mxu1 }
  0xa0   :  { %939 = vmatpush.xpose.msk.msra.mxu0 %vm370_vm1, %v165_v28  ;;  %923 = vmatpush.xpose.msk.msra.mxu3 %vm370_vm1, %v148_v31 }
  0xa4   :  { %v231_v30 = vpop.f32.mrf.mxu2  ;;  %940 = vmatpush.xpose.msk.msra.mxu0 %vm370_vm1, %v164_v32  ;;  %v311_v42 = vpop.f32.mrf.mxu0 }
  0xa5   :  { %v232_v35 = vadd.f32 %v946_v33, %v231_v30 }
  0xa6   :  { %v291_v40 = vpop.f32.mrf.mxu3 }
  0xa7   :  { %v252_v37 = vadd.f32 %v251_v36, %v232_v35 }
  0xbe   :  { %v331_v44 = vpop.f32.mrf.mxu1 }
  0xc4   :  { %v271_v38 = vpop.f32.mrf.mxu2 }
  0xc5   :  { %v272_v39 = vadd.f32 %v271_v38, %v252_v37 }
  0xc7   :  { %v292_v41 = vadd.f32 %v291_v40, %v272_v39 }
  0xc9   :  { %v312_v43 = vadd.f32 %v311_v42, %v292_v41 }
  0xcb   :  { %v332_v45 = vadd.f32 %v331_v44, %v312_v43 }
  0xe4   :  { %v351_v46 = vpop.f32.mrf.mxu2 }
  0xe5   :  { %v352_v47 = vadd.f32 %v351_v46, %v332_v45 }
  0xe7   :  { %856 = vmatmul.msk.f32.vlgmr.msrb.gmra.mxu3 %vm370_vm1, %v352_v47  ;;  %873 = vmatmul.msk.f32.vlgmr.msrb.gmra.mxu0 %vm370_vm1, %v352_v47 }
  0xe8   :  { %890 = vmatmul.msk.f32.vlgmr.msra.gmra.mxu1 %vm370_vm1, %v352_v47  ;;  %907 = vmatmul.msk.f32.vlgmr.msrb.gmra.mxu2 %vm370_vm1, %v352_v47 }
  0xef   :  { %924 = vmatmul.msk.f32.vlgmr.msra.gmra.mxu3 %vm370_vm1, %v352_v47  ;;  %941 = vmatmul.msk.f32.vlgmr.msra.gmra.mxu0 %vm370_vm1, %v352_v47 }
  0xf0   :  { %944 = vmatmul.msk.f32.vlgmr.msrb.gmra.mxu1 %vm370_vm1, %v352_v47 }
 0x164   :  { %v705_v51 = vpop.f32.mrf.mxu0 }
 0x165   :  { %v706_v52 = vadd.f32 %v705_v51, %v357_v49  ;;  %v725_v53 = vpop.f32.mrf.mxu1 }
 0x166   :  { %v726_v54 = vadd.f32 %v725_v53, %v358_v50 }
 0x167   :  { %809 = vst [vmem:[#allocation2 + $0x8] sm:$0xff] %v706_v52 }
 0x168   :  { %810 = vst [vmem:[#allocation2 + $0x10] sm:$0xff] %v726_v54 }
 0x16a   :  { %v685_v58 = vpop.f32.mrf.mxu3 }
 0x16b   :  { %v686_v60 = vadd.f32 %v685_v58, %v356_v55  ;;  %v745_v61 = vpop.f32.mrf.mxu2 }
 0x16c   :  { %v746_v62 = vadd.f32 %v745_v61, %v359_v56  ;;  %v785_v63 = vpop.f32.mrf.mxu0 }
 0x16d   :  { %808 = vst [vmem:[#allocation2] sm:$0xff] %v686_v60  ;;  %v786_v0 = vadd.f32 %v785_v63, %v361_v57  ;;  %v805_v1 = vpop.f32.mrf.mxu1 }
 0x16e   :  { %811 = vst [vmem:[#allocation2 + $0x18] sm:$0xff] %v746_v62  ;;  %v806_v2 = vadd.f32 %v805_v1, %v362_v59 }
 0x16f   :  { %813 = vst [vmem:[#allocation2 + $0x28] sm:$0xff] %v786_v0 }
 0x170   :  { %814 = vst.msk [vmem:[#allocation2 + $0x30] sm:$0xff] %vm186_vm0, %v806_v2 }
 0x172   :  { %v765_v4 = vpop.f32.mrf.mxu3 }
 0x173   :  { %v766_v5 = vadd.f32 %v765_v4, %v360_v3 }
 0x175   :  { %812 = vst [vmem:[#allocation2 + $0x20] sm:$0xff] %v766_v5 }
 0x176   :  { %825 = dma.vmem_to_hbm [thread:$0]  %s821_s29, 896, %s823_s7, [#allocation3]  }
 0x177   :  { %971 = dma.done.wait [#allocation3], 896  }
 0x178   :  { %972 = vsyncadd [#allocation3], 4294966400 }
 0x179   :  { %830 = vsyncpa [#allocation3], 1 }

</bundles_post_ra>
